<compile_context>
chip_gen: v7x
topology: tpu7x:2x2x1
jax: 0.10.0
libtpu: 0.0.40
codegen_flags: <defaults>
</compile_context>

<pallas_src>
import jax
import jax.numpy as jnp
from jax.experimental import pallas as pl
from jax.experimental.pallas import tpu as pltpu

HIDDEN_DIM = 256     # hidden width of the synthetic embedding net
EMBED_DIM = 32       # true embedding width returned to the caller
EMBED_PAD = 128      # lane-dense padded embedding width used inside the kernel


def _round_up(x, m):
    return ((x + m - 1) // m) * m


def embed_kernel(alpha_ref, x_ref, w1_ref, b1_ref, w2_ref, b2_ref, o_ref, h_acc):
    """Fused (x @ w1 + b1) -> PReLU -> (@ w2 + b2), K-tiled with f32 accumulator.

    alpha_ref : SMEM (1,) f32                scalar-prefetched PReLU slope
    x_ref     : VMEM (TB, TK) bf16           batch tile x contraction tile
    w1_ref    : VMEM (TK, HIDDEN_DIM) bf16
    b1_ref    : VMEM (1, HIDDEN_DIM) f32
    w2_ref    : VMEM (HIDDEN_DIM, EMBED_PAD) bf16
    b2_ref    : VMEM (1, EMBED_PAD) f32
    o_ref     : VMEM (TB, EMBED_PAD) f32     resident across the K axis
    h_acc     : VMEM (TB, HIDDEN_DIM) f32    scratch accumulator
    """
    k = pl.program_id(1)

    @pl.when(k == 0)
    def _init():
        h_acc[...] = jnp.zeros_like(h_acc)

    # Partial first matmul over this K tile (bf16 operands, f32 accumulation).
    h_acc[...] += jnp.dot(x_ref[...], w1_ref[...],
                          preferred_element_type=jnp.float32)

    @pl.when(k == pl.num_programs(1) - 1)
    def _finalize():
        h = h_acc[...] + b1_ref[...]
        alpha = alpha_ref[0]
        h = jnp.where(h > 0, h, alpha * h)          # PReLU, single shared slope
        out = jnp.dot(h.astype(jnp.bfloat16), w2_ref[...],
                      preferred_element_type=jnp.float32) + b2_ref[...]
        o_ref[...] = out.astype(o_ref.dtype)


def embedding_forward(x_flat, params, *, tile_b=128, tile_k=512):
    """Run the synthetic embedding net on [N, D] inputs via one Pallas call."""
    w1, b1, alpha, w2, b2 = params
    n, d = x_flat.shape

    # Hardware-aligned tiles (sublane=8, lane=128), capped by the padded problem.
    tb = min(tile_b, _round_up(n, 8))
    tk = min(tile_k, _round_up(d, 128))
    n_pad = _round_up(n, tb)
    d_pad = _round_up(d, tk)

    # Zero-pad; padded rows/cols contribute nothing to the dots.
    x_p = jnp.pad(x_flat, ((0, n_pad - n), (0, d_pad - d))).astype(jnp.bfloat16)
    w1_p = jnp.pad(w1, ((0, d_pad - d), (0, 0)))

    grid = (n_pad // tb, d_pad // tk)

    out = pl.pallas_call(
        embed_kernel,
        out_shape=jax.ShapeDtypeStruct((n_pad, EMBED_PAD), jnp.float32),
        grid_spec=pltpu.PrefetchScalarGridSpec(
            num_scalar_prefetch=1,                       # alpha -> SMEM
            grid=grid,
            in_specs=[
                pl.BlockSpec((tb, tk), lambda i, k, a: (i, k)),                 # x
                pl.BlockSpec((tk, HIDDEN_DIM), lambda i, k, a: (k, 0)),         # w1
                pl.BlockSpec((1, HIDDEN_DIM), lambda i, k, a: (0, 0)),          # b1
                pl.BlockSpec((HIDDEN_DIM, EMBED_PAD), lambda i, k, a: (0, 0)),  # w2
                pl.BlockSpec((1, EMBED_PAD), lambda i, k, a: (0, 0)),           # b2
            ],
            out_specs=pl.BlockSpec((tb, EMBED_PAD), lambda i, k, a: (i, 0)),
            scratch_shapes=[pltpu.VMEM((tb, HIDDEN_DIM), jnp.float32)],
        ),
        compiler_params=pltpu.CompilerParams(
            dimension_semantics=("parallel", "arbitrary"),
            vmem_limit_bytes=32 * 1024 * 1024,
        ),
    )(alpha, x_p, w1_p, b1, w2, b2)

    return out[:n, :EMBED_DIM]


@jax.jit
def siamese_forward(x1, x2, params):
    """SiameseNet.forward: (embedding(x1), embedding(x2)) with shared weights."""
    b = x1.shape[0]
    x1f = x1.reshape(b, -1)
    x2f = x2.reshape(b, -1)
    # Stack both branches so the shared-weight embedding runs once; under jit
    # this fuses with the pad/bf16-cast inside embedding_forward.
    xf = jnp.concatenate([x1f, x2f], axis=0)
    out = embedding_forward(xf, params)
    return out[:b], out[b:]


@jax.jit
def get_embedding(x, params):
    """SiameseNet.get_embedding."""
    return embedding_forward(x.reshape(x.shape[0], -1), params)


def init_params(key, in_dim, hidden=HIDDEN_DIM, embed=EMBED_DIM):
    """Synthetic embedding-net params: bf16 weights, f32 biases, PReLU slope."""
    k1, k2, k3, k4 = jax.random.split(key, 4)
    w1 = (jax.random.normal(k1, (in_dim, hidden), jnp.float32) * 0.02
          ).astype(jnp.bfloat16)
    b1 = jax.random.normal(k2, (1, hidden), jnp.float32) * 0.01
    alpha = jnp.full((1,), 0.25, jnp.float32)            # nn.PReLU default init
    w2 = (jax.random.normal(k3, (hidden, embed), jnp.float32) * 0.02
          ).astype(jnp.bfloat16)
    b2 = jax.random.normal(k4, (1, embed), jnp.float32) * 0.01
    # Lane-dense padding of the output dim (32 -> 128 zero columns).
    w2 = jnp.pad(w2, ((0, 0), (0, EMBED_PAD - embed)))
    b2 = jnp.pad(b2, ((0, 0), (0, EMBED_PAD - embed)))
    return (w1, b1, alpha, w2, b2)


def _reference_embedding(x_flat, params):
    """Pure-JAX reference (same bf16 weight quantization) for validation."""
    w1, b1, alpha, w2, b2 = params
    xq = x_flat.astype(jnp.bfloat16).astype(jnp.float32)
    h = xq @ w1.astype(jnp.float32) + b1
    h = jnp.where(h > 0, h, alpha[0] * h)
    out = h.astype(jnp.bfloat16).astype(jnp.float32) @ w2.astype(jnp.float32) + b2
    return out[:, :EMBED_DIM]


if __name__ == "__main__":
    B, C, H, W = 2, 4, 16, 16
    key = jax.random.PRNGKey(0)
    kx1, kx2, kp = jax.random.split(key, 3)
    x1 = jax.random.normal(kx1, (B, C, H, W), jnp.float32)
    x2 = jax.random.normal(kx2, (B, C, H, W), jnp.float32)
    params = init_params(kp, in_dim=C * H * W)

    out1, out2 = siamese_forward(x1, x2, params)
    jax.block_until_ready((out1, out2))

    assert out1.shape == (B, EMBED_DIM) and out2.shape == (B, EMBED_DIM)
    assert out1.dtype == jnp.float32 and out2.dtype == jnp.float32

    ref1 = _reference_embedding(x1.reshape(B, -1), params)
    ref2 = _reference_embedding(x2.reshape(B, -1), params)
    assert jnp.allclose(out1, ref1, atol=2e-2, rtol=2e-2)
    assert jnp.allclose(out2, ref2, atol=2e-2, rtol=2e-2)

    print("KERNEL_OK")
</pallas_src>

<mosaic_0001>
module attributes {stable_mosaic.version = 11 : i64} {
  func.func @embed_kernel(%arg0: i32, %arg1: i32, %arg2: memref<1xf32, #tpu.memory_space<smem>>, %arg3: memref<8x512xbf16, #tpu.memory_space<vmem>>, %arg4: memref<512x256xbf16, #tpu.memory_space<vmem>>, %arg5: memref<1x256xf32, #tpu.memory_space<vmem>>, %arg6: memref<256x128xbf16, #tpu.memory_space<vmem>>, %arg7: memref<1x128xf32, #tpu.memory_space<vmem>>, %arg8: memref<8x128xf32, #tpu.memory_space<vmem>>, %arg9: memref<8x256xf32, #tpu.memory_space<vmem>>) attributes {dimension_semantics = [#tpu.dimension_semantics<parallel>, #tpu.dimension_semantics<arbitrary>], iteration_bounds = array<i64: 1, 2>, scalar_prefetch = 1 : i64, scratch_operands = 1 : i64, tpu.core_type = #tpu.core_type<tc>, window_params = [{transform_indices = @transform_0, window_bounds = array<i64: 8, 512>}, {transform_indices = @transform_1, window_bounds = array<i64: 512, 256>}, {pipeline_mode = #tpu.pipeline_mode<synchronous>, transform_indices = @transform_2, window_bounds = array<i64: 1, 256>}, {pipeline_mode = #tpu.pipeline_mode<synchronous>, transform_indices = @transform_3, window_bounds = array<i64: 256, 128>}, {pipeline_mode = #tpu.pipeline_mode<synchronous>, transform_indices = @transform_4, window_bounds = array<i64: 1, 128>}, {transform_indices = @transform_5, window_bounds = array<i64: 8, 128>}]} {
    %c0_i32 = arith.constant 0 : i32
    %0 = arith.cmpi eq, %arg1, %c0_i32 : i32
    %1 = arith.extui %0 : i1 to i32
    %c0_i32_0 = arith.constant 0 : i32
    %2 = arith.cmpi ne, %1, %c0_i32_0 : i32
    scf.if %2 {
      %cst_9 = arith.constant 0.000000e+00 : f32
      %12 = vector.broadcast %cst_9 : f32 to vector<8x256xf32>
      %c0_10 = arith.constant 0 : index
      %c0_11 = arith.constant 0 : index
      %13 = vector.load %arg9[%c0_10, %c0_11] : memref<8x256xf32, #tpu.memory_space<vmem>>, vector<8x256xf32>
      tpu.vector_store %arg9[%c0_10, %c0_11], %12 {strides = array<i32>} : memref<8x256xf32, #tpu.memory_space<vmem>>, vector<8x256xf32>,
    } else {
    }
    %c0 = arith.constant 0 : index
    %c0_1 = arith.constant 0 : index
    %3 = vector.load %arg9[%c0, %c0_1] : memref<8x256xf32, #tpu.memory_space<vmem>>, vector<8x256xf32>
    %c0_2 = arith.constant 0 : index
    %c0_3 = arith.constant 0 : index
    %4 = vector.load %arg3[%c0_2, %c0_3] : memref<8x512xbf16, #tpu.memory_space<vmem>>, vector<8x512xbf16>
    %c0_4 = arith.constant 0 : index
    %c0_5 = arith.constant 0 : index
    %5 = vector.load %arg4[%c0_4, %c0_5] : memref<512x256xbf16, #tpu.memory_space<vmem>>, vector<512x256xbf16>
    %cst = arith.constant dense<0.000000e+00> : vector<8x256xf32>
    %6 = tpu.matmul %4, %5, %cst {dimension_numbers = #tpu.dot_dimension_numbers<[1], [0], [0], [1], [0, 0, 1, 1], [], []>} : vector<8x512xbf16>, vector<512x256xbf16>, vector<8x256xf32> -> vector<8x256xf32>
    %7 = arith.addf %3, %6 : vector<8x256xf32>
    %c0_6 = arith.constant 0 : index
    %c0_7 = arith.constant 0 : index
    %8 = vector.load %arg9[%c0_6, %c0_7] : memref<8x256xf32, #tpu.memory_space<vmem>>, vector<8x256xf32>
    tpu.vector_store %arg9[%c0_6, %c0_7], %7 {strides = array<i32>} : memref<8x256xf32, #tpu.memory_space<vmem>>, vector<8x256xf32>,
    %c1_i32 = arith.constant 1 : i32
    %9 = arith.cmpi eq, %arg1, %c1_i32 : i32
    %10 = arith.extui %9 : i1 to i32
    %c0_i32_8 = arith.constant 0 : i32
    %11 = arith.cmpi ne, %10, %c0_i32_8 : i32
    scf.if %11 {
      %c0_9 = arith.constant 0 : index
      %c0_10 = arith.constant 0 : index
      %12 = vector.load %arg9[%c0_9, %c0_10] : memref<8x256xf32, #tpu.memory_space<vmem>>, vector<8x256xf32>
      %c0_11 = arith.constant 0 : index
      %c0_12 = arith.constant 0 : index
      %13 = vector.load %arg5[%c0_11, %c0_12] : memref<1x256xf32, #tpu.memory_space<vmem>>, vector<1x256xf32>
      %14 = vector.broadcast %13 : vector<1x256xf32> to vector<8x256xf32>
      %15 = arith.addf %12, %14 : vector<8x256xf32>
      %c0_13 = arith.constant 0 : index
      %16 = memref.load %arg2[%c0_13] : memref<1xf32, #tpu.memory_space<smem>>
      %cst_14 = arith.constant 0.000000e+00 : f32
      %17 = vector.broadcast %cst_14 : f32 to vector<8x256xf32>
      %18 = arith.cmpf ogt, %15, %17 : vector<8x256xf32>
      %19 = vector.broadcast %16 : f32 to vector<8x256xf32>
      %20 = arith.mulf %19, %15 : vector<8x256xf32>
      %21 = arith.select %18, %15, %20 : vector<8x256xi1>, vector<8x256xf32>
      %22 = arith.truncf %21 : vector<8x256xf32> to vector<8x256xbf16>
      %c0_15 = arith.constant 0 : index
      %c0_16 = arith.constant 0 : index
      %23 = vector.load %arg6[%c0_15, %c0_16] : memref<256x128xbf16, #tpu.memory_space<vmem>>, vector<256x128xbf16>
      %cst_17 = arith.constant dense<0.000000e+00> : vector<8x128xf32>
      %24 = tpu.matmul %22, %23, %cst_17 {dimension_numbers = #tpu.dot_dimension_numbers<[1], [0], [0], [1], [0, 0, 1, 1], [], []>} : vector<8x256xbf16>, vector<256x128xbf16>, vector<8x128xf32> -> vector<8x128xf32>
      %c0_18 = arith.constant 0 : index
      %c0_19 = arith.constant 0 : index
      %25 = vector.load %arg7[%c0_18, %c0_19] : memref<1x128xf32, #tpu.memory_space<vmem>>, vector<1x128xf32>
      %26 = vector.broadcast %25 : vector<1x128xf32> to vector<8x128xf32>
      %27 = arith.addf %24, %26 : vector<8x128xf32>
      %c0_20 = arith.constant 0 : index
      %c0_21 = arith.constant 0 : index
      %28 = vector.load %arg8[%c0_20, %c0_21] : memref<8x128xf32, #tpu.memory_space<vmem>>, vector<8x128xf32>
      tpu.vector_store %arg8[%c0_20, %c0_21], %27 {strides = array<i32>} : memref<8x128xf32, #tpu.memory_space<vmem>>, vector<8x128xf32>,
    } else {
    }
    return
  }
  func.func @transform_0(%arg0: i32, %arg1: i32, %arg2: memref<1xf32, #tpu.memory_space<smem>>) -> (i32, i32) {
    %c0_i32 = arith.constant 0 : i32
    return %arg0, %arg1 : i32, i32
  }
  func.func @transform_1(%arg0: i32, %arg1: i32, %arg2: memref<1xf32, #tpu.memory_space<smem>>) -> (i32, i32) {
    %c0_i32 = arith.constant 0 : i32
    %c0_i32_0 = arith.constant 0 : i32
    return %arg1, %c0_i32 : i32, i32
  }
  func.func @transform_2(%arg0: i32, %arg1: i32, %arg2: memref<1xf32, #tpu.memory_space<smem>>) -> (i32, i32) {
    %c0_i32 = arith.constant 0 : i32
    %c0_i32_0 = arith.constant 0 : i32
    %c0_i32_1 = arith.constant 0 : i32
    return %c0_i32, %c0_i32_0 : i32, i32
  }
  func.func @transform_3(%arg0: i32, %arg1: i32, %arg2: memref<1xf32, #tpu.memory_space<smem>>) -> (i32, i32) {
    %c0_i32 = arith.constant 0 : i32
    %c0_i32_0 = arith.constant 0 : i32
    %c0_i32_1 = arith.constant 0 : i32
    return %c0_i32, %c0_i32_0 : i32, i32
  }
  func.func @transform_4(%arg0: i32, %arg1: i32, %arg2: memref<1xf32, #tpu.memory_space<smem>>) -> (i32, i32) {
    %c0_i32 = arith.constant 0 : i32
    %c0_i32_0 = arith.constant 0 : i32
    %c0_i32_1 = arith.constant 0 : i32
    return %c0_i32, %c0_i32_0 : i32, i32
  }
  func.func @transform_5(%arg0: i32, %arg1: i32, %arg2: memref<1xf32, #tpu.memory_space<smem>>) -> (i32, i32) {
    %c0_i32 = arith.constant 0 : i32
    %c0_i32_0 = arith.constant 0 : i32
    return %arg0, %c0_i32 : i32, i32
  }
}

</mosaic_0001>

<bundles_post_ra>
// kernel: siamese_forward.1
= control target key start
LH: loop header
LB: loop body
LE: loop exit
PB: predicated region body
PF: predicated region fallthrough
CT: control target
= control target key end

     0   :  { %s1759_s0 = inlined_call_operand.<no memory space> [shape: f32[1], index: 0, kind: input, shape index: {}]   ;;  %s1760_s1 = inlined_call_operand.vmem [shape: bf16[8,1024], index: 1, kind: input, shape index: {}]   ;;  %s1761_s2 = inlined_call_operand.hbm [shape: bf16[1024,256], index: 2, kind: input, shape index: {}]   ;;  %s1762_s3 = inlined_call_operand.vmem [shape: f32[1,256], index: 3, kind: input, shape index: {}]   ;;  %s1763_s4 = inlined_call_operand.vmem [shape: bf16[256,128], index: 4, kind: input, shape index: {}]   ;;  %s1764_s5 = inlined_call_operand.vmem [shape: f32[1,128], index: 5, kind: input, shape index: {}]   ;;  %s1765_s6 = inlined_call_operand.vmem [shape: f32[8,128], index: 6, kind: output, shape index: {}]  }
   0x1   :  { %11 = sst [smem:[#allocation4]] %s1759_s0 }
   0x2   :  { %12 = vsyncpa [#allocation6], 0 }
   0x3   :  { %14 = vsyncpa [#allocation6 + $0x1], 0  ;;  %s1507_s23 = smov 0   ;;  %s1509_s24 = smov 0  }
   0x4   :  { %s1511_s25 = smov 0   ;;  %s1513_s26 = smov 0  }
   0x5   :  { %s1515_s27 = smov 0   ;;  %s1517_s28 = smov 0  }
   0x6 LB: > { %s1084_s0 = sadd.s32 4294967295, %s1463_s28   ;;  %s29_s29 = sadd.s32 1, %s1459_s27  ;;  %s1463_s28 = sphi %s1517_s28, %s20_s28   ;;  %s1459_s27 = sphi %s1515_s27, %s1773_s27   ;;  %s1455_s26 = sphi %s1513_s26, %s1772_s26   ;;  %s1451_s25 = sphi %s1511_s25, %s1771_s25   ;;  %s1447_s24 = sphi %s1509_s24, %s1770_s24   ;;  %s1443_s23 = sphi %s1507_s23, %s1769_s23  }
   0x7   : > { %p30_p0 = scmp.ge.s32.totalorder %s29_s29, 2  ;;  %s67_s30 = sadd.s32 1, %s1451_s25 }
   0x8   : > { %p74_p1 = scmp.ne.s32.totalorder %s1451_s25, %s1447_s24  ;;  %p75_p2 = scmp.eq.s32.totalorder %s1463_s28, 0 }
   0x9   : > { %s1775_s29 = smov (%p30_p0, %s29_s29), 0  ;;  %p80_p4 = scmp.ne.s32.totalorder %s1447_s24, %s1443_s23 }
   0xa   : > { %p1543_p3 = por %p75_p2, %p74_p1  ;;  %s64_s8 = ssub.s32 %s1459_s27, %s1775_s29 }
   0xb   : > { %p81_p5 = scmp.eq.s32.totalorder %s1084_s0, 0  ;;  %p65_p6 = scmp.eq.s32.totalorder %s64_s8, 0 }
   0xc   : > { %p1215_p8 = scmp.lt.s32.totalorder %s1463_s28, 2  ;;  %s215_s11 = sand.u32 1, %s1451_s25  }
   0xd   : > { %p1550_p7 = por %p81_p5, %p80_p4  ;;  %s1186_s12 = sshll.u32 %s1459_s27, 13 }
   0xe   : > { %s1556_s10 = scalar_select %p65_p6, %s1451_s25, %s67_s30  }
   0xf   : > { %s1087_s13 = sshll.u32 %s215_s11, 9  ;;  %s1563_s16 = scalar_lea.hbm %s1761_s2, %s1186_s12 }
  0x10   : > { %s219_s17 = scalar_lea.vmem [#allocation5], %s1087_s13  ;;  %p1567_p9 = pnand %p1215_p8, %p1543_p3 }
  0x11   : > { %s227_s18 = sshll.u32 %s219_s17, 4  ;;  %s1573_s20 = scalar_lea.sflag [#allocation6], %s215_s11  ;;  %s1571_s18 = int_to_ptr.vmem [resolvable:$true] %s227_s18 }
  0x12   : > { %s1383_s21 = scalar_lea.hbm %s1563_s16, 8192  ;;  %p1385_p11 = pneg %p1567_p9 }
  0x13   : > { %p1384_p10 = scmp.ne.s32.totalorder %s1563_s16, %s1383_s21  ;;  %s1388_s0 = scalar_lea.hbm %s1761_s2, 16384 }
  0x14   : > { %p1389_p0 = scmp.lt.u32.totalorder %s1563_s16, %s1761_s2  ;;  %p1390_p1 = scmp.lt.u32.totalorder %s1388_s0, %s1383_s21 }
  0x15   : > { %p1386_p12 = pnand %p1385_p11, %p1384_p10  ;;  %p1392_p3 = scmp.lt.u32.totalorder %s1383_s21, %s1563_s16 }
  0x16   : > { %p1391_p2 = por %p1390_p1, %p1389_p0 }
  0x17   : > { %p1387_p13 = pneg %p1386_p12 }
  0x18   : > { %p1393_p4 = por %p1392_p3, %p1391_p2 }
  0x1a   : > { %p1394_p5 = pnand %p1393_p4, %p1387_p13 }
  0x1c   : > { %1397 = shalt.err (!%p1394_p5)
}
  0x1d   : > { %s1398_s8 = scalar_lea.vmem %s1571_s18, 8192  ;;  %s1465_s11 = smov [#allocation5]  }
  0x1e   : > { %p1399_p6 = scmp.ne.s32.totalorder %s1571_s18, %s1398_s8  ;;  %s1403_s12 = sshll.u32 %s1465_s11, 4  ;;  %s1404_s12 = int_to_ptr.vmem [resolvable:$false] %s1403_s12 }
  0x1f   : > { %s1405_s13 = scalar_lea.vmem %s1404_s12, 16384  ;;  %p1406_p12 = scmp.lt.s32.totalorder %s1571_s18, %s1404_s12 }
  0x20   : > { %p1401_p8 = pnand %p1399_p6, %p1385_p11  ;;  %p1407_p0 = scmp.lt.s32.totalorder %s1405_s13, %s1398_s8 }
  0x22   : > { %p1402_p10 = pneg %p1401_p8  ;;  %p1408_p1 = por %p1407_p0, %p1406_p12 }
  0x24   : > { %p1409_p2 = pnand %p1408_p1, %p1402_p10 }
  0x26   : > { %1412 = shalt.err (!%p1409_p2)
}
  0x27   : > { %s1466_s14 = smov 128   ;;  %s1467_s15 = smov 8  }
  0x28   : > { %1214 = dma.hbm_to_vmem [thread:$0]  (!%p1567_p9), %s1563_s16, 8192, %s1571_s18, %s1573_s20, %s1466_s14, %s1466_s14, %s1467_s15  }
  0x29   : > { %p1091_p11 = scmp.ge.s32.totalorder %s1463_s28, 1  ;;  %p235_p13 = scmp.lt.s32.totalorder %s1463_s28, 3 }
  0x2b   : > { %p236_p3 = pnand %p1091_p11, %p235_p13 }
  0x2c   : > { %s241_s17 = sand.u32 (!%p236_p3), 1, %s1447_s24  }
  0x2d   : > { %239 = sbr.rel (%p236_p3) target bundleno = 579 (0x243), region = 40  ;;  %s1092_s21 = sshll.u32 (!%p236_p3), %s241_s17, 9 }
  0x2e   : > { %s242_s22 = scalar_lea.sflag (!%p236_p3), [#allocation6], %s241_s17  ;;  %s1604_s23 = scalar_lea.vmem (!%p236_p3), [#allocation5], %s1092_s21 }
  0x34   : > { %1438 = dma.done.wait (%p1550_p7), %s242_s22, 8192  }
  0x35   : > { %1440 = vsyncadd (%p1550_p7), %s242_s22, 4294959104  ;;  %s1093_s0 = sshll.u32 %s1455_s26, 2  ;;  %p1095_p9 = scmp.ne.s32.totalorder %s1455_s26, 0 }
  0x36   : > { %p283_p4 = scmp.lt.s32.totalorder %s1093_s0, 7  ;;  %v1468_v0 = vmov (!%p1095_p9), 0.0  }
  0x37   : > { %299 = sbr.rel (%p1095_p9) target bundleno = 62 (0x3e), region = 48  ;;  %300 = vst [vmem:[#allocation2] sm:$0xff] (!%p1095_p9), %v1468_v0  ;;  %301 = vst [vmem:[#allocation2 + $0x8] sm:$0xff] (!%p1095_p9), %v1468_v0 }
  0x38   : > { %s1777_s0 = smov (!%p283_p4, %s1093_s0), 7 }
  0x39   : > { %s1094_s16 = sshll.u32 %s1777_s0, 2 }
  0x3a   : > { %s1614_s20 = scalar_lea.vmem %s1760_s1, %s1094_s16 }
  0x3e PF: > { %v1267_v1 = vld [vmem:[%s1604_s23 + $0x4] ss:$8 sps:$4 sm:$0xff]   ;;  %v1271_v3 = vld [vmem:[%s1604_s23] ss:$8 sps:$4 sm:$0xff]   ;;  %v1273_v5 = vld [vmem:[%s1604_s23 + $0x14] ss:$8 sps:$4 sm:$0xff]  }
  0x3f   : > { %v1269_v2 = vld [vmem:[%s1604_s23 + $0x104] ss:$8 sps:$4 sm:$0xff]   ;;  %704 = vmatprep.subr.bf16.mxu0 %v1267_v1  ;;  %v1272_v4 = vld [vmem:[%s1604_s23 + $0x100] ss:$8 sps:$4 sm:$0xff]   ;;  %v1275_v6 = vld [vmem:[%s1604_s23 + $0x114] ss:$8 sps:$4 sm:$0xff]  }
  0x40   : > { %745 = vmatprep.subr.bf16.mxu1 %v1269_v2  ;;  %705 = vmatpush1.bf16.msra.mxu0 %v1271_v3  ;;  %v1277_v7 = vld [vmem:[%s1604_s23 + $0x10] ss:$8 sps:$4 sm:$0xff]   ;;  %v1279_v9 = vld [vmem:[%s1604_s23 + $0x24] ss:$8 sps:$4 sm:$0xff]   ;;  %v1283_v11 = vld [vmem:[%s1604_s23 + $0x20] ss:$8 sps:$4 sm:$0xff]  }
  0x41   : > { %746 = vmatpush1.bf16.msra.mxu1 %v1272_v4  ;;  %706 = vmatprep.subr.bf16.mxu0 %v1273_v5  ;;  %v1278_v8 = vld [vmem:[%s1604_s23 + $0x110] ss:$8 sps:$4 sm:$0xff]   ;;  %v1281_v10 = vld [vmem:[%s1604_s23 + $0x124] ss:$8 sps:$4 sm:$0xff]   ;;  %v1284_v12 = vld [vmem:[%s1604_s23 + $0x120] ss:$8 sps:$4 sm:$0xff]  }
  0x42   : > { %747 = vmatprep.subr.bf16.mxu1 %v1275_v6  ;;  %v1285_v13 = vld [vmem:[%s1604_s23 + $0x34] ss:$8 sps:$4 sm:$0xff]   ;;  %v1289_v15 = vld [vmem:[%s1604_s23 + $0x30] ss:$8 sps:$4 sm:$0xff]   ;;  %v1291_v17 = vld [vmem:[%s1604_s23 + $0x44] ss:$8 sps:$4 sm:$0xff]  }
  0x43   : > { %v1287_v14 = vld [vmem:[%s1604_s23 + $0x134] ss:$8 sps:$4 sm:$0xff]   ;;  %v1290_v16 = vld [vmem:[%s1604_s23 + $0x130] ss:$8 sps:$4 sm:$0xff]   ;;  %v1293_v18 = vld [vmem:[%s1604_s23 + $0x144] ss:$8 sps:$4 sm:$0xff]  }
  0x44   : > { %707 = vmatpush1.bf16.msra.mxu0 %v1277_v7  ;;  %v1295_v19 = vld [vmem:[%s1604_s23 + $0x40] ss:$8 sps:$4 sm:$0xff]   ;;  %v1297_v21 = vld [vmem:[%s1604_s23 + $0x54] ss:$8 sps:$4 sm:$0xff]   ;;  %v1301_v23 = vld [vmem:[%s1604_s23 + $0x50] ss:$8 sps:$4 sm:$0xff]  }
  0x45   : > { %748 = vmatpush1.bf16.msra.mxu1 %v1278_v8  ;;  %708 = vmatprep.subr.bf16.mxu0 %v1279_v9  ;;  %v1296_v20 = vld [vmem:[%s1604_s23 + $0x140] ss:$8 sps:$4 sm:$0xff]   ;;  %v1299_v22 = vld [vmem:[%s1604_s23 + $0x154] ss:$8 sps:$4 sm:$0xff]   ;;  %v1302_v24 = vld [vmem:[%s1604_s23 + $0x150] ss:$8 sps:$4 sm:$0xff]  }
  0x46   : > { %749 = vmatprep.subr.bf16.mxu1 %v1281_v10  ;;  %v1303_v25 = vld [vmem:[%s1604_s23 + $0x64] ss:$8 sps:$4 sm:$0xff]   ;;  %v1307_v27 = vld [vmem:[%s1604_s23 + $0x60] ss:$8 sps:$4 sm:$0xff]   ;;  %v1309_v29 = vld [vmem:[%s1604_s23 + $0x74] ss:$8 sps:$4 sm:$0xff]  }
  0x47   : > { %v1305_v26 = vld [vmem:[%s1604_s23 + $0x164] ss:$8 sps:$4 sm:$0xff]   ;;  %v1308_v28 = vld [vmem:[%s1604_s23 + $0x160] ss:$8 sps:$4 sm:$0xff]   ;;  %v1311_v30 = vld [vmem:[%s1604_s23 + $0x174] ss:$8 sps:$4 sm:$0xff]  }
  0x48   : > { %709 = vmatpush1.bf16.msra.mxu0 %v1283_v11  ;;  %v1313_v31 = vld [vmem:[%s1604_s23 + $0x70] ss:$8 sps:$4 sm:$0xff]   ;;  %v1315_v33 = vld [vmem:[%s1604_s23 + $0x84] ss:$8 sps:$4 sm:$0xff]   ;;  %v1319_v35 = vld [vmem:[%s1604_s23 + $0x80] ss:$8 sps:$4 sm:$0xff]  }
  0x49   : > { %750 = vmatpush1.bf16.msra.mxu1 %v1284_v12  ;;  %710 = vmatprep.subr.bf16.mxu0 %v1285_v13  ;;  %v1314_v32 = vld [vmem:[%s1604_s23 + $0x170] ss:$8 sps:$4 sm:$0xff]   ;;  %v1317_v34 = vld [vmem:[%s1604_s23 + $0x184] ss:$8 sps:$4 sm:$0xff]   ;;  %v1320_v36 = vld [vmem:[%s1604_s23 + $0x180] ss:$8 sps:$4 sm:$0xff]  }
  0x4a   : > { %751 = vmatprep.subr.bf16.mxu1 %v1287_v14  ;;  %v1321_v37 = vld [vmem:[%s1604_s23 + $0x94] ss:$8 sps:$4 sm:$0xff]   ;;  %v1325_v39 = vld [vmem:[%s1604_s23 + $0x90] ss:$8 sps:$4 sm:$0xff]   ;;  %v1327_v41 = vld [vmem:[%s1604_s23 + $0xa4] ss:$8 sps:$4 sm:$0xff]  }
  0x4b   : > { %v1323_v38 = vld [vmem:[%s1604_s23 + $0x194] ss:$8 sps:$4 sm:$0xff]   ;;  %v1326_v40 = vld [vmem:[%s1604_s23 + $0x190] ss:$8 sps:$4 sm:$0xff]   ;;  %v1329_v42 = vld [vmem:[%s1604_s23 + $0x1a4] ss:$8 sps:$4 sm:$0xff]  }
  0x4c   : > { %711 = vmatpush1.bf16.msra.mxu0 %v1289_v15  ;;  %v1331_v43 = vld [vmem:[%s1604_s23 + $0xa0] ss:$8 sps:$4 sm:$0xff]   ;;  %v1333_v45 = vld [vmem:[%s1604_s23 + $0xb4] ss:$8 sps:$4 sm:$0xff]   ;;  %v1337_v50 = vld [vmem:[%s1604_s23 + $0xb0] ss:$8 sps:$4 sm:$0xff]  }
  0x4d   : > { %752 = vmatpush1.bf16.msra.mxu1 %v1290_v16  ;;  %712 = vmatprep.subr.bf16.mxu0 %v1291_v17  ;;  %v1332_v44 = vld [vmem:[%s1604_s23 + $0x1a0] ss:$8 sps:$4 sm:$0xff]   ;;  %v1335_v46 = vld [vmem:[%s1604_s23 + $0x1b4] ss:$8 sps:$4 sm:$0xff]   ;;  %v1338_v51 = vld [vmem:[%s1604_s23 + $0x1b0] ss:$8 sps:$4 sm:$0xff]  }
  0x4e   : > { %753 = vmatprep.subr.bf16.mxu1 %v1293_v18  ;;  %v304_v47 = vld [vmem:[%s1614_s20] sm:$0xff]  ;;  %v305_v49 = vld [vmem:[%s1614_s20 + $0x8] sm:$0xff]  ;;  %v1339_v53 = vld [vmem:[%s1604_s23 + $0xc4] ss:$8 sps:$4 sm:$0xff]   ;;  %p1164_p7 = scmp.ne.s32.totalorder %s1455_s26, 1 }
  0x4f   : > { %v1097_v48 = vcombine.high %v304_v47, %v304_v47  ;;  %v1099_v52 = vcombine.high %v305_v49, %v305_v49  ;;  %v1341_v54 = vld [vmem:[%s1604_s23 + $0x1c4] ss:$8 sps:$4 sm:$0xff]   ;;  %v1343_v55 = vld [vmem:[%s1604_s23 + $0xc0] ss:$8 sps:$4 sm:$0xff]   ;;  %v1345_v57 = vld [vmem:[%s1604_s23 + $0xd4] ss:$8 sps:$4 sm:$0xff]   ;;  %v1096_v5 = vcombine.low %v304_v47, %v304_v47  ;;  %v1098_v6 = vcombine.low %v305_v49, %v305_v49 }
  0x50   : > { %713 = vmatpush1.bf16.msra.mxu0 %v1295_v19  ;;  %v1344_v56 = vld [vmem:[%s1604_s23 + $0x1c0] ss:$8 sps:$4 sm:$0xff]   ;;  %v1347_v58 = vld [vmem:[%s1604_s23 + $0x1d4] ss:$8 sps:$4 sm:$0xff]   ;;  %v1349_v59 = vld [vmem:[%s1604_s23 + $0xd0] ss:$8 sps:$4 sm:$0xff]  }
  0x51   : > { %754 = vmatpush1.bf16.msra.mxu1 %v1296_v20  ;;  %714 = vmatprep.subr.bf16.mxu0 %v1297_v21  ;;  %v1350_v60 = vld [vmem:[%s1604_s23 + $0x1d0] ss:$8 sps:$4 sm:$0xff]   ;;  %v1351_v61 = vld [vmem:[%s1604_s23 + $0xe4] ss:$8 sps:$4 sm:$0xff]   ;;  %v1355_v63 = vld [vmem:[%s1604_s23 + $0xe0] ss:$8 sps:$4 sm:$0xff]  }
  0x52   : > { %755 = vmatprep.subr.bf16.mxu1 %v1299_v22  ;;  %736 = vmatprep.mubr.bf16.mxu0 %v1097_v48  ;;  %v1353_v62 = vld [vmem:[%s1604_s23 + $0x1e4] ss:$8 sps:$4 sm:$0xff]   ;;  %v1356_v0 = vld [vmem:[%s1604_s23 + $0x1e0] ss:$8 sps:$4 sm:$0xff]   ;;  %v1357_v1 = vld [vmem:[%s1604_s23 + $0xf4] ss:$8 sps:$4 sm:$0xff]  }
  0x53   : > { %777 = vmatprep.mubr.bf16.mxu1 %v1099_v52  ;;  %v1359_v2 = vld [vmem:[%s1604_s23 + $0x1f4] ss:$8 sps:$4 sm:$0xff]   ;;  %v1361_v3 = vld [vmem:[%s1604_s23 + $0xf0] ss:$8 sps:$4 sm:$0xff]   ;;  %s810_s12 = sld [smem:[#allocation4]] (!%p1164_p7)  ;;  %v1381_v49 = vld [vmem:[%s1763_s4 + $0x78] sm:$0xff] (!%p1164_p7)  }
  0x54   : > { %715 = vmatpush1.bf16.msra.mxu0 %v1301_v23  ;;  %v1362_v4 = vld [vmem:[%s1604_s23 + $0x1f0] ss:$8 sps:$4 sm:$0xff]   ;;  %v1382_v52 = vld [vmem:[%s1763_s4 + $0x38] sm:$0xff] (!%p1164_p7)  }
  0x55   : > { %756 = vmatpush1.bf16.msra.mxu1 %v1302_v24  ;;  %716 = vmatprep.subr.bf16.mxu0 %v1303_v25  ;;  %v302_v8 = vld [vmem:[#allocation2] sm:$0xff]  ;;  %v303_v12 = vld [vmem:[#allocation2 + $0x8] sm:$0xff]  ;;  %v1371_v25 = vld [vmem:[%s1763_s4 + $0x50] sm:$0xff] (!%p1164_p7)  }
  0x56   : > { %757 = vmatprep.subr.bf16.mxu1 %v1305_v26  ;;  %v1367_v21 = vld [vmem:[%s1763_s4 + $0x40] sm:$0xff] (!%p1164_p7)   ;;  %v1369_v23 = vld [vmem:[%s1763_s4 + $0x48] sm:$0xff] (!%p1164_p7)   ;;  %v798_v26 = vlaneseq (!%p1164_p7) }
  0x57   : > { %v1368_v22 = vld [vmem:[%s1763_s4] sm:$0xff] (!%p1164_p7)   ;;  %v1370_v24 = vld [vmem:[%s1763_s4 + $0x8] sm:$0xff] (!%p1164_p7)  }
  0x58   : > { %717 = vmatpush1.bf16.msra.mxu0 %v1307_v27  ;;  %v1372_v27 = vld [vmem:[%s1763_s4 + $0x10] sm:$0xff] (!%p1164_p7)  }
  0x59   : > { %758 = vmatpush1.bf16.msra.mxu1 %v1308_v28  ;;  %718 = vmatprep.subr.bf16.mxu0 %v1309_v29  ;;  %v1373_v28 = vld [vmem:[%s1763_s4 + $0x58] sm:$0xff] (!%p1164_p7)   ;;  %v799_v29 = vshrl.u32 (!%p1164_p7), %v798_v26, 7 }
  0x5a   : > { %759 = vmatprep.subr.bf16.mxu1 %v1311_v30  ;;  %v1374_v30 = vld [vmem:[%s1763_s4 + $0x18] sm:$0xff] (!%p1164_p7)  }
  0x5c   : > { %719 = vmatpush1.bf16.msra.mxu0 %v1313_v31  ;;  %v1375_v31 = vld [vmem:[%s1763_s4 + $0x60] sm:$0xff] (!%p1164_p7)  }
  0x5d   : > { %760 = vmatpush1.bf16.msra.mxu1 %v1314_v32  ;;  %720 = vmatprep.subr.bf16.mxu0 %v1315_v33  ;;  %v800_v32 = vsub.s32 (!%p1164_p7), 0, %v799_v29  ;;  %v804_v33 = vsub.s32 (!%p1164_p7), 1, %v799_v29 }
  0x5e   : > { %761 = vmatprep.subr.bf16.mxu1 %v1317_v34  ;;  %v1376_v34 = vld [vmem:[%s1763_s4 + $0x20] sm:$0xff] (!%p1164_p7)  }
  0x60   : > { %721 = vmatpush1.bf16.msra.mxu0 %v1319_v35  ;;  %v1377_v35 = vld [vmem:[%s1763_s4 + $0x68] sm:$0xff] (!%p1164_p7)  }
  0x61   : > { %762 = vmatpush1.bf16.msra.mxu1 %v1320_v36  ;;  %722 = vmatprep.subr.bf16.mxu0 %v1321_v37 }
  0x62   : > { %763 = vmatprep.subr.bf16.mxu1 %v1323_v38  ;;  %v796_v38 = vld [vmem:[%s1762_s3] sm:$0x3] (!%p1164_p7) }
  0x64   : > { %723 = vmatpush1.bf16.msra.mxu0 %v1325_v39  ;;  %v801_v39 = vrot.slane (!%p1164_p7), %v796_v38, %v800_v32 }
  0x65   : > { %764 = vmatpush1.bf16.msra.mxu1 %v1326_v40  ;;  %724 = vmatprep.subr.bf16.mxu0 %v1327_v41  ;;  %v805_v40 = vrot.slane (!%p1164_p7), %v796_v38, %v804_v33  ;;  %v1378_v41 = vld [vmem:[%s1763_s4 + $0x28] sm:$0xff] (!%p1164_p7)  }
  0x66   : > { %765 = vmatprep.subr.bf16.mxu1 %v1329_v42 }
  0x68   : > { %725 = vmatpush1.bf16.msra.mxu0 %v1331_v43 }
  0x69   : > { %766 = vmatpush1.bf16.msra.mxu1 %v1332_v44  ;;  %726 = vmatprep.subr.bf16.mxu0 %v1333_v45  ;;  %v1379_v44 = vld [vmem:[%s1763_s4 + $0x70] sm:$0xff] (!%p1164_p7)   ;;  %v813_v45 = vstv (!%p1164_p7), %s810_s12 }
  0x6a   : > { %767 = vmatprep.subr.bf16.mxu1 %v1335_v46  ;;  %v1380_v46 = vld [vmem:[%s1763_s4 + $0x30] sm:$0xff] (!%p1164_p7)  }
  0x6c   : > { %727 = vmatpush1.bf16.msra.mxu0 %v1337_v50 }
  0x6d   : > { %768 = vmatpush1.bf16.msra.mxu1 %v1338_v51  ;;  %728 = vmatprep.subr.bf16.mxu0 %v1339_v53 }
  0x6e   : > { %769 = vmatprep.subr.bf16.mxu1 %v1341_v54 }
  0x70   : > { %729 = vmatpush1.bf16.msra.mxu0 %v1343_v55 }
  0x71   : > { %770 = vmatpush1.bf16.msra.mxu1 %v1344_v56  ;;  %730 = vmatprep.subr.bf16.mxu0 %v1345_v57  ;;  %v1165_v56 = vld [vmem:[%s1764_s5] ss:$0 sm:$0xff] (!%p1164_p7) }
  0x72   : > { %771 = vmatprep.subr.bf16.mxu1 %v1347_v58 }
  0x74   : > { %731 = vmatpush1.bf16.msra.mxu0 %v1349_v59 }
  0x75   : > { %772 = vmatpush1.bf16.msra.mxu1 %v1350_v60  ;;  %732 = vmatprep.subr.bf16.mxu0 %v1351_v61 }
  0x76   : > { %773 = vmatprep.subr.bf16.mxu1 %v1353_v62 }
  0x78   : > { %733 = vmatpush1.bf16.msra.mxu0 %v1355_v63 }
  0x79   : > { %774 = vmatpush1.bf16.msra.mxu1 %v1356_v0  ;;  %734 = vmatprep.subr.bf16.mxu0 %v1357_v1 }
  0x7a   : > { %775 = vmatprep.subr.bf16.mxu1 %v1359_v2 }
  0x7c   : > { %735 = vmatpush1.bf16.msra.mxu0 %v1361_v3 }
  0x7d   : > { %776 = vmatpush1.bf16.msra.mxu1 %v1362_v4  ;;  %1187 = vmatprep.subr.bf16.mxu0 (!%p1164_p7), %v1367_v21 }
  0x7f   : > { %737 = vmatmul.mubr.bf16.vlgmr.msra.gmra.mrb[0].mxu0 %v1096_v5 }
  0x80   : > { %778 = vmatmul.mubr.bf16.vlgmr.msra.gmra.mrb[0].mxu1 %v1098_v6  ;;  %1188 = vmatpush3.bf16.msra.mxu0 (!%p1164_p7), %v1368_v22 }
  0x81   : > { %1189 = vmatprep.subr.bf16.mxu0 (!%p1164_p7), %v1369_v23 }
  0x84   : > { %1190 = vmatpush3.bf16.msra.mxu0 (!%p1164_p7), %v1370_v24 }
  0x85   : > { %1191 = vmatprep.subr.bf16.mxu0 (!%p1164_p7), %v1371_v25 }
  0x88   : > { %1192 = vmatpush3.bf16.msra.mxu0 (!%p1164_p7), %v1372_v27 }
  0x89   : > { %1193 = vmatprep.subr.bf16.mxu0 (!%p1164_p7), %v1373_v28 }
  0x8c   : > { %1194 = vmatpush3.bf16.msra.mxu0 (!%p1164_p7), %v1374_v30 }
  0x8d   : > { %1195 = vmatprep.subr.bf16.mxu0 (!%p1164_p7), %v1375_v31 }
  0x90   : > { %1196 = vmatpush3.bf16.msra.mxu0 (!%p1164_p7), %v1376_v34 }
  0x91   : > { %1197 = vmatprep.subr.bf16.mxu0 (!%p1164_p7), %v1377_v35 }
  0x94   : > { %1198 = vmatpush3.bf16.msra.mxu0 (!%p1164_p7), %v1378_v41 }
  0x95   : > { %1199 = vmatprep.subr.bf16.mxu0 (!%p1164_p7), %v1379_v44 }
  0x98   : > { %1200 = vmatpush3.bf16.msra.mxu0 (!%p1164_p7), %v1380_v46 }
  0x99   : > { %1201 = vmatprep.subr.bf16.mxu0 (!%p1164_p7), %v1381_v49 }
  0x9c   : > { %1202 = vmatpush3.bf16.msra.mxu0 (!%p1164_p7), %v1382_v52 }
 0x152   : > { %v738_v7 = vpop.f32.mrb[0].mxu0 }
 0x153   : > { %v779_v9 = vpop.f32.mrb[0].mxu1  ;;  %v740_v11 = vpop.f32.mrb[1].mxu0  ;;  %793 = sbr.rel (%p1164_p7) target bundleno = 579 (0x243), region = 52 }
 0x154   : > { %v780_v10 = vadd.f32 %v779_v9, %v738_v7  ;;  %v781_v13 = vpop.f32.mrb[1].mxu1  ;;  %v742_v15 = vpop.f32.mrb[2].mxu0 }
 0x155   : > { %v782_v14 = vadd.f32 %v781_v13, %v740_v11  ;;  %v783_v16 = vpop.f32.mrb[2].mxu1  ;;  %v743_v18 = vpop.f32.mrb[3].mxu0 }
 0x156   : > { %v786_v17 = vadd.f32 %v780_v10, %v302_v8  ;;  %v784_v19 = vpop.f32.mrb[3].mxu1 }
 0x157   : > { %v787_v20 = vadd.f32 %v782_v14, %v303_v12 }
 0x158   : > { %788 = vst [vmem:[#allocation2] sm:$0xff] %v786_v17 }
 0x159   : > { %789 = vst [vmem:[#allocation2 + $0x8] sm:$0xff] %v787_v20 }
 0x15f   : > { %v794_v36 = vld [vmem:[#allocation2] sm:$0xff] }
 0x160   : > { %v795_v37 = vld [vmem:[#allocation2 + $0x8] sm:$0xff]  ;;  %v808_v42 = vadd.f32 %v801_v39, %v794_v36 }
 0x161   : > { %v809_v43 = vadd.f32 %v805_v40, %v795_v37 }
 0x162   : > { %v814_v47 = vmul.f32 %v813_v45, %v808_v42  ;;  %vm811_vm1 = vcmp.gt.f32.partialorder %v808_v42, 0.0 }
 0x163   : > { %vm812_vm0 = vcmp.gt.f32.partialorder %v809_v43, 0.0  ;;  %v815_v48 = vmul.f32 %v813_v45, %v809_v43 }
 0x164   : > { %v816_v53 = vsel %vm811_vm1, %v808_v42, %v814_v47 }
 0x165   : > { %v817_v50 = vsel %vm812_vm0, %v809_v43, %v815_v48  ;;  %v818_v54 = vpack.c.bf16 %v816_v53, %v816_v53 }
 0x166   : > { %v819_v51 = vpack.c.bf16 %v817_v50, %v817_v50 }
 0x168   : > { %987 = vmatprep.mubr.bf16.mxu0 %v819_v51 }
 0x169   : > { %988 = vmatmul.mubr.bf16.vlgmr.msra.gmra.mrb[0].mxu0 %v818_v54 }
 0x23c   : > { %v1203_v55 = vpop.f32.mrb[0].mxu0 }
 0x23d   : > { %v1204_v57 = vpop.f32.mrb[1].mxu0 }
 0x23e   : > { %v1205_v58 = vadd.f32 %v1204_v57, %v1203_v55  ;;  %v1206_v59 = vpop.f32.mrb[2].mxu0 }
 0x23f   : > { %v1207_v60 = vpop.f32.mrb[3].mxu0 }
 0x240   : > { %v990_v61 = vadd.f32 %v1205_v58, %v1165_v56 }
 0x242   : > { %995 = vst [vmem:[%s1765_s6] sm:$0xff] %v990_v61 }
 0x243 PF: > { %s20_s28 = sadd.s32 1, %s1463_s28   ;;  %s1769_s23 = smov %s1447_s24 }
 0x244   : > { %p17_p5 = scmp.ge.s32.totalorder %s20_s28, 4   ;;  %s1770_s24 = smov %s1451_s25 }
 0x245   : > { %s1771_s25 = smov %s1556_s10  ;;  %s1772_s26 = smov %s1459_s27 }
 0x246   : > { %s1773_s27 = smov %s1775_s29  ;;  %19 = sbr.rel (!%p17_p5) target bundleno = 6 (0x6), region = 91 }
 0x24d   :  { %1015 = vsyncpa [#allocation6], 1 }
 0x24e   :  { %1017 = vsyncpa [#allocation6 + $0x1], 1 }

</bundles_post_ra>
